<compile_context>
chip_gen: v7x
topology: tpu7x:2x2x1
jax: 0.10.0
libtpu: 0.0.40
codegen_flags: <defaults>
</compile_context>

<pallas_src>
import functools

import jax
import jax.numpy as jnp
from jax.experimental import pallas as pl
from jax.experimental.pallas import tpu as pltpu

LANES = 128      # vreg lane width
SUBLANES = 8     # f32 sublanes per vreg


def _axpby_const_kernel(a_ref, b_ref, o_ref, *, w1, w2, c):
    # a_ref, b_ref, o_ref: VMEM (tm, 128) f32 tiles.  Constants baked in.
    o_ref[...] = a_ref[...] * w1 + b_ref[...] * w2 + c


def _axpby_smem_kernel(params_ref, a_ref, b_ref, o_ref):
    # params_ref: SMEM (3,) f32 -> [w1, w2, c] with c = b1 + b2
    o_ref[...] = (a_ref[...] * params_ref[0]
                  + b_ref[...] * params_ref[1]
                  + params_ref[2])


def _pick_tile_rows(rows, tile_m):
    """Tile rows: multiple of 8 sublanes, <= tile_m, and clamped so the grid
    has >= 2 steps whenever rows allows it (megacore + pipeline overlap)."""
    half = (rows // 2) // SUBLANES * SUBLANES
    if half == 0:
        half = SUBLANES
    return max(SUBLANES, min(tile_m, half))


def _run_pallas_main(a2d, b2d, w1, w2, c, tm):
    """Elementwise a*w1 + b*w2 + c on lane-dense (rows, 128) slabs."""
    rows = a2d.shape[0]
    grid = (pl.cdiv(rows, tm),)          # partial last block is masked by Pallas
    block = pl.BlockSpec((tm, LANES), lambda i: (i, 0))

    params_are_python_scalars = all(
        isinstance(p, (int, float)) for p in (w1, w2, c))

    if params_are_python_scalars:
        kernel = functools.partial(
            _axpby_const_kernel, w1=float(w1), w2=float(w2), c=float(c))
        in_specs = [block, block]
        operands = (a2d, b2d)
    else:
        kernel = _axpby_smem_kernel
        params = jnp.stack([jnp.asarray(w1, jnp.float32).reshape(()),
                            jnp.asarray(w2, jnp.float32).reshape(()),
                            jnp.asarray(c, jnp.float32).reshape(())])
        in_specs = [pl.BlockSpec(memory_space=pltpu.SMEM), block, block]
        operands = (params, a2d, b2d)

    return pl.pallas_call(
        kernel,
        out_shape=jax.ShapeDtypeStruct((rows, LANES), jnp.float32),
        grid=grid,
        in_specs=in_specs,
        out_specs=block,
        compiler_params=pltpu.CompilerParams(
            dimension_semantics=("parallel",),
        ),
    )(*operands)


def custom_module_forward_pallas(a, b, w1, b1, w2, b2, *, tile_m=1024):
    """a, b: f32[N].  Returns f32[N, 1], matching torch CustomModule output."""
    assert tile_m % SUBLANES == 0, "tile_m must be a multiple of 8 sublanes"
    n = a.shape[0]
    a = a.astype(jnp.float32)
    b = b.astype(jnp.float32)

    params_are_python_scalars = all(
        isinstance(p, (int, float)) for p in (w1, b1, w2, b2))
    if params_are_python_scalars:
        w1f, w2f = float(w1), float(w2)
        c = float(b1) + float(b2)        # fold both biases into one constant
    else:
        w1f = jnp.asarray(w1, jnp.float32)
        w2f = jnp.asarray(w2, jnp.float32)
        c = jnp.asarray(b1, jnp.float32) + jnp.asarray(b2, jnp.float32)

    n_tail = n % LANES
    n_main = n - n_tail

    pieces = []
    if n_main > 0:
        # Lane-dense repack.  For N % 128 == 0 this is a contiguous reshape
        # (no HBM copy); otherwise only the 128-aligned prefix is sliced.
        a_main = a if n_tail == 0 else a[:n_main]
        b_main = b if n_tail == 0 else b[:n_main]
        rows = n_main // LANES
        a2d = a_main.reshape(rows, LANES)
        b2d = b_main.reshape(rows, LANES)
        tm = _pick_tile_rows(rows, tile_m)
        out2d = _run_pallas_main(a2d, b2d, w1f, w2f, c, tm)
        pieces.append(out2d.reshape(n_main, 1))
    if n_tail > 0:
        # <128-element ragged tail: tiny XLA epilogue (cheaper than padding
        # both full input arrays and re-slicing the output).
        a_t = a[n_main:]
        b_t = b[n_main:]
        pieces.append((a_t * w1f + b_t * w2f + c)[:, None])

    if len(pieces) == 1:
        return pieces[0]
    return jnp.concatenate(pieces, axis=0)


def custom_module_forward(a, b, w1, b1, w2, b2, *, min_pallas_n=1024):
    """Dispatcher: tiny N -> fused XLA elementwise, larger N -> Pallas kernel."""
    if a.shape[0] < min_pallas_n:
        c = jnp.float32(b1) + jnp.float32(b2)
        return (a.astype(jnp.float32) * jnp.float32(w1)
                + b.astype(jnp.float32) * jnp.float32(w2) + c)[:, None]
    return custom_module_forward_pallas(a, b, w1, b1, w2, b2)


def reference_forward(a, b, w1, b1, w2, b2):
    out1 = a[:, None] * w1 + b1
    out2 = b[:, None] * w2 + b2
    return out1 + out2


if __name__ == "__main__":
    key = jax.random.PRNGKey(0)
    k1, k2, k3, k4, k5, k6 = jax.random.split(key, 6)

    # Deterministic "Linear(1,1)" parameters (synthetic, not a checkpoint load).
    w1, b1 = 0.5, 0.1    # linear1.weight, linear1.bias
    w2, b2 = -0.25, 0.3  # linear2.weight, linear2.bias

    # --- N a multiple of 128: zero-copy lane-dense path, multi-step grid,
    #     constant-baked kernel (Python-float params) ---
    n0 = 4096
    a0 = jax.random.normal(k1, (n0,), dtype=jnp.float32)
    b0 = jax.random.normal(k2, (n0,), dtype=jnp.float32)
    out0 = jax.block_until_ready(
        custom_module_forward_pallas(a0, b0, w1, b1, w2, b2))
    ref0 = reference_forward(a0, b0, w1, b1, w2, b2)
    assert out0.shape == (n0, 1)
    assert jnp.allclose(out0, ref0, atol=1e-5, rtol=1e-5)

    # --- ragged N (not a multiple of 128): Pallas main slab + tiny XLA tail,
    #     exercising the SMEM-params path with array-valued parameters ---
    n1 = 2000
    a1 = jax.random.normal(k3, (n1,), dtype=jnp.float32)
    b1_in = jax.random.normal(k4, (n1,), dtype=jnp.float32)
    out1 = jax.block_until_ready(
        custom_module_forward_pallas(
            a1, b1_in,
            jnp.float32(w1), jnp.float32(b1), jnp.float32(w2), jnp.float32(b2),
            tile_m=64))
    ref1 = reference_forward(a1, b1_in, w1, b1, w2, b2)
    assert out1.shape == (n1, 1)
    assert jnp.allclose(out1, ref1, atol=1e-5, rtol=1e-5)

    # --- tiny N matching the module's test usage: dispatcher XLA path ---
    n2 = 8
    a2 = jax.random.normal(k5, (n2,), dtype=jnp.float32)
    b2_in = jax.random.normal(k6, (n2,), dtype=jnp.float32)
    out2 = jax.block_until_ready(
        custom_module_forward(a2, b2_in, w1, b1, w2, b2))
    ref2 = reference_forward(a2, b2_in, w1, b1, w2, b2)
    assert out2.shape == (n2, 1)
    assert jnp.allclose(out2, ref2, atol=1e-5, rtol=1e-5)

    print("KERNEL_OK")
</pallas_src>

<mosaic_0001>
module attributes {stable_mosaic.version = 11 : i64} {
  func.func @_axpby_const_kernel(%arg0: i32, %arg1: memref<16x128xf32, #tpu.memory_space<vmem>>, %arg2: memref<16x128xf32, #tpu.memory_space<vmem>>, %arg3: memref<16x128xf32, #tpu.memory_space<vmem>>) attributes {dimension_semantics = [#tpu.dimension_semantics<parallel>], iteration_bounds = array<i64: 2>, scalar_prefetch = 0 : i64, scratch_operands = 0 : i64, tpu.core_type = #tpu.core_type<tc>, window_params = [{transform_indices = @transform_0, window_bounds = array<i64: 16, 128>}, {transform_indices = @transform_1, window_bounds = array<i64: 16, 128>}, {transform_indices = @transform_2, window_bounds = array<i64: 16, 128>}]} {
    %c0 = arith.constant 0 : index
    %c0_0 = arith.constant 0 : index
    %0 = vector.load %arg1[%c0, %c0_0] : memref<16x128xf32, #tpu.memory_space<vmem>>, vector<16x128xf32>
    %cst = arith.constant 5.000000e-01 : f32
    %1 = vector.broadcast %cst : f32 to vector<16x128xf32>
    %2 = arith.mulf %0, %1 : vector<16x128xf32>
    %c0_1 = arith.constant 0 : index
    %c0_2 = arith.constant 0 : index
    %3 = vector.load %arg2[%c0_1, %c0_2] : memref<16x128xf32, #tpu.memory_space<vmem>>, vector<16x128xf32>
    %cst_3 = arith.constant -2.500000e-01 : f32
    %4 = vector.broadcast %cst_3 : f32 to vector<16x128xf32>
    %5 = arith.mulf %3, %4 : vector<16x128xf32>
    %6 = arith.addf %2, %5 : vector<16x128xf32>
    %cst_4 = arith.constant 4.000000e-01 : f32
    %7 = vector.broadcast %cst_4 : f32 to vector<16x128xf32>
    %8 = arith.addf %6, %7 : vector<16x128xf32>
    %c0_5 = arith.constant 0 : index
    %c0_6 = arith.constant 0 : index
    %9 = vector.load %arg3[%c0_5, %c0_6] : memref<16x128xf32, #tpu.memory_space<vmem>>, vector<16x128xf32>
    tpu.vector_store %arg3[%c0_5, %c0_6], %8 {strides = array<i32>} : memref<16x128xf32, #tpu.memory_space<vmem>>, vector<16x128xf32>,
    return
  }
  func.func @transform_0(%arg0: i32) -> (i32, i32) {
    %c0_i32 = arith.constant 0 : i32
    %c0_i32_0 = arith.constant 0 : i32
    return %arg0, %c0_i32 : i32, i32
  }
  func.func @transform_1(%arg0: i32) -> (i32, i32) {
    %c0_i32 = arith.constant 0 : i32
    %c0_i32_0 = arith.constant 0 : i32
    return %arg0, %c0_i32 : i32, i32
  }
  func.func @transform_2(%arg0: i32) -> (i32, i32) {
    %c0_i32 = arith.constant 0 : i32
    %c0_i32_0 = arith.constant 0 : i32
    return %arg0, %c0_i32 : i32, i32
  }
}

</mosaic_0001>

<bundles_post_ra>
// kernel: tpu_custom_call.1
= control target key start
LH: loop header
LB: loop body
LE: loop exit
PB: predicated region body
PF: predicated region fallthrough
CT: control target
= control target key end

     0   :  { %7 = vsyncpa [#allocation3], 0  ;;  %s782_s0 = inlined_call_operand.hbm [shape: f32[32,128], index: 0, kind: input, shape index: {}]   ;;  %s783_s1 = inlined_call_operand.hbm [shape: f32[32,128], index: 1, kind: input, shape index: {}]   ;;  %s784_s2 = inlined_call_operand.hbm [shape: f32[32,128], index: 2, kind: output, shape index: {}]  }
   0x1   :  { %9 = vsyncpa [#allocation3 + $0x1], 0 }
   0x2   :  { %10 = vsyncpa [#allocation6], 0 }
   0x3   :  { %12 = vsyncpa [#allocation6 + $0x1], 0 }
   0x4   :  { %13 = vsyncpa [#allocation4], 0 }
   0x5   :  { %15 = vsyncpa [#allocation4 + $0x1], 0  ;;  %s559_s9 = smov 0   ;;  %s561_s10 = smov 0  }
   0x6   :  { %s563_s11 = smov 0   ;;  %s565_s12 = smov 0  }
   0x7 LB: > { %s580_s13 = sadd.s32 4294967295, %s535_s12   ;;  %s329_s14 = sadd.s32 4294967294, %s535_s12   ;;  %s535_s12 = sphi %s565_s12, %s800_s12   ;;  %s531_s11 = sphi %s563_s11, %s799_s11   ;;  %s527_s10 = sphi %s561_s10, %s798_s10   ;;  %s523_s9 = sphi %s559_s9, %s797_s9  }
   0x8   : > { %s584_s15 = sadd.s32 1, %s535_s12   ;;  %s28_s16 = sadd.s32 1, %s531_s11 }
   0x9   : > { %s25_s17 = ssub.s32 %s535_s12, %s584_s15  ;;  %p35_p0 = scmp.ne.s32.totalorder %s531_s11, %s527_s10 }
   0xa   : > { %p26_p1 = scmp.eq.s32.totalorder %s25_s17, 0  ;;  %p36_p2 = scmp.eq.s32.totalorder %s535_s12, 0 }
   0xb   : > { %p41_p3 = scmp.ne.s32.totalorder %s527_s10, %s523_s9  ;;  %p42_p4 = scmp.eq.s32.totalorder %s580_s13, 0 }
   0xc   : > { %s596_s18 = scalar_select %p26_p1, %s531_s11, %s28_s16  }
   0xd   : > { %p598_p5 = por %p36_p2, %p35_p0  ;;  %p602_p6 = por %p42_p4, %p41_p3 }
   0xe   : > { %p91_p7 = scmp.eq.s32.totalorder %s580_s13, 1  ;;  %p97_p8 = scmp.eq.s32.totalorder %s329_s14, 1 }
   0xf   : > { %s788_s20 = scalar_select %p602_p6, 1, 0 }
  0x10   : > { %p367_p10 = scmp.lt.s32.totalorder %s535_s12, 2  ;;  %p609_p11 = por %p91_p7, %p35_p0 }
  0x11   : > { %p613_p12 = por %p97_p8, %p41_p3  ;;  %s618_s23 = sand.u32 1, %s531_s11  }
  0x12   : > { %s789_s21 = scalar_select %p609_p11, 1, 0 }
  0x13   : > { %s790_s22 = scalar_select %p613_p12, 1, 0 }
  0x14   : > { %s347_s24 = sshll.u32 %s535_s12, 8  ;;  %s332_s25 = sshll.u32 %s618_s23, 4 }
  0x15   : > { %s627_s28 = scalar_lea.hbm %s782_s0, %s347_s24  ;;  %s121_s29 = scalar_lea.vmem [#allocation2], %s332_s25 }
  0x16   : > { %s128_s30 = sshll.u32 %s121_s29, 4  ;;  %p633_p13 = pnand %p367_p10, %p598_p5  ;;  %s637_s30 = int_to_ptr.vmem [resolvable:$true] %s128_s30 }
  0x17   : > { %s118_s4 = scalar_lea.sflag [#allocation3], %s618_s23  ;;  %s405_s5 = scalar_lea.hbm %s627_s28, 256 }
  0x18   : > { %p406_p0 = scmp.ne.s32.totalorder %s627_s28, %s405_s5  ;;  %p407_p1 = pneg %p633_p13 }
  0x19   : > { %s410_s8 = scalar_lea.hbm %s782_s0, 512  ;;  %p411_p4 = scmp.lt.u32.totalorder %s627_s28, %s782_s0 }
  0x1a   : > { %p408_p2 = pnand %p407_p1, %p406_p0  ;;  %p412_p5 = scmp.lt.u32.totalorder %s410_s8, %s405_s5 }
  0x1b   : > { %p414_p8 = scmp.lt.u32.totalorder %s405_s5, %s627_s28 }
  0x1c   : > { %p409_p3 = pneg %p408_p2  ;;  %p413_p7 = por %p412_p5, %p411_p4 }
  0x1e   : > { %p415_p10 = por %p414_p8, %p413_p7 }
  0x20   : > { %p416_p9 = pnand %p415_p10, %p409_p3 }
  0x22   : > { %419 = shalt.err (!%p416_p9)
}
  0x23   : > { %s420_s17 = scalar_lea.vmem %s637_s30, 256  ;;  %s537_s19 = smov [#allocation2]  }
  0x24   : > { %p421_p0 = scmp.ne.s32.totalorder %s637_s30, %s420_s17  ;;  %s425_s26 = sshll.u32 %s537_s19, 4  ;;  %s426_s26 = int_to_ptr.vmem [resolvable:$false] %s425_s26 }
  0x25   : > { %s427_s27 = scalar_lea.vmem %s426_s26, 512  ;;  %p428_p11 = scmp.lt.s32.totalorder %s637_s30, %s426_s26 }
  0x26   : > { %p423_p2 = pnand %p421_p0, %p407_p1  ;;  %p429_p4 = scmp.lt.s32.totalorder %s427_s27, %s420_s17 }
  0x28   : > { %p424_p12 = pneg %p423_p2  ;;  %p430_p5 = por %p429_p4, %p428_p11 }
  0x2a   : > { %p431_p7 = pnand %p430_p5, %p424_p12 }
  0x2c   : > { %434 = shalt.err (!%p431_p7)
}
  0x2d   : > { %s538_s29 = smov 128   ;;  %s539_s5 = smov 8  }
  0x2e   : > { %359 = dma.hbm_to_vmem [thread:$0]  (!%p633_p13), %s627_s28, 256, %s637_s30, %s118_s4, %s538_s29, %s538_s29, %s539_s5  }
  0x2f   : > { %p338_p9 = scmp.ge.s32.totalorder %s535_s12, 1  ;;  %p157_p11 = scmp.lt.s32.totalorder %s535_s12, 3 }
  0x30   : > { %s681_s14 = scalar_lea.hbm %s783_s1, %s347_s24  ;;  %s142_s16 = scalar_lea.vmem [#allocation5], %s332_s25 }
  0x31   : > { %p672_p12 = pnand %p338_p9, %p157_p11  ;;  %s149_s17 = sshll.u32 %s142_s16, 4  ;;  %s685_s17 = int_to_ptr.vmem [resolvable:$true] %s149_s17 }
  0x32   : > { %s139_s28 = scalar_lea.sflag [#allocation6], %s618_s23  ;;  %s435_s30 = scalar_lea.hbm %s681_s14, 256 }
  0x33   : > { %p436_p3 = scmp.ne.s32.totalorder %s681_s14, %s435_s30  ;;  %s440_s24 = scalar_lea.hbm %s783_s1, 512 }
  0x34   : > { %p441_p0 = scmp.lt.u32.totalorder %s681_s14, %s783_s1  ;;  %p442_p2 = scmp.lt.u32.totalorder %s440_s24, %s435_s30 }
  0x35   : > { %p438_p8 = pnand %p436_p3, %p407_p1  ;;  %p444_p5 = scmp.lt.u32.totalorder %s435_s30, %s681_s14 }
  0x36   : > { %p443_p4 = por %p442_p2, %p441_p0 }
  0x37   : > { %p439_p10 = pneg %p438_p8 }
  0x38   : > { %p445_p7 = por %p444_p5, %p443_p4 }
  0x3a   : > { %p446_p9 = pnand %p445_p7, %p439_p10 }
  0x3c   : > { %449 = shalt.err (!%p446_p9)
}
  0x3d   : > { %s450_s25 = scalar_lea.vmem %s685_s17, 256  ;;  %s540_s7 = smov [#allocation5]  }
  0x3e   : > { %p451_p11 = scmp.ne.s32.totalorder %s685_s17, %s450_s25  ;;  %s455_s8 = sshll.u32 %s540_s7, 4  ;;  %s456_s8 = int_to_ptr.vmem [resolvable:$false] %s455_s8 }
  0x3f   : > { %s457_s16 = scalar_lea.vmem %s456_s8, 512  ;;  %p458_p6 = scmp.lt.s32.totalorder %s685_s17, %s456_s8 }
  0x40   : > { %p453_p3 = pnand %p451_p11, %p407_p1  ;;  %p459_p0 = scmp.lt.s32.totalorder %s457_s16, %s450_s25 }
  0x42   : > { %p454_p8 = pneg %p453_p3  ;;  %p460_p2 = por %p459_p0, %p458_p6 }
  0x44   : > { %p461_p4 = pnand %p460_p2, %p454_p8 }
  0x46   : > { %464 = shalt.err (!%p461_p4)
}
  0x47   : > { %362 = dma.hbm_to_vmem [thread:$0]  (!%p633_p13), %s681_s14, 256, %s685_s17, %s139_s28, %s538_s29, %s538_s29, %s539_s5  }
  0x48   : > { %161 = sbr.rel (%p672_p12) target bundleno = 109 (0x6d), region = 28  ;;  %s719_s30 = sand.u32 (!%p672_p12), 1, %s527_s10  }
  0x49   : > { %s339_s4 = sshll.u32 (!%p672_p12), %s719_s30, 4  ;;  %s164_s19 = scalar_lea.sflag (!%p672_p12), [#allocation3], %s719_s30 }
  0x4a   : > { %s167_s3 = scalar_lea.vmem (!%p672_p12), [#allocation2], %s339_s4  ;;  %p793_p6 = scmp.ne.s32.totalorder (!%p672_p12), %s788_s20, 0 }
  0x4f   : > { %510 = dma.done.wait (%p793_p6), %s164_s19, 256  }
  0x50   : > { %512 = vsyncadd (%p793_p6), %s164_s19, 4294967040  ;;  %s173_s23 = scalar_lea.sflag [#allocation6], %s719_s30  ;;  %s176_s29 = scalar_lea.vmem [#allocation5], %s339_s4 }
  0x51   : > { %514 = dma.done.wait (%p793_p6), %s173_s23, 256  }
  0x52   : > { %516 = vsyncadd (%p793_p6), %s173_s23, 4294967040  ;;  %v205_v0 = vld [vmem:[%s167_s3] sm:$0xff]  ;;  %v206_v2 = vld [vmem:[%s167_s3 + $0x8] sm:$0xff]  ;;  %s201_s5 = scalar_lea.vmem [#allocation7], %s339_s4  ;;  %s349_s14 = sshll.u32 %s580_s13, 8 }
  0x53   : > { %v209_v1 = vld [vmem:[%s176_s29] sm:$0xff]  ;;  %v207_v3 = vmul.f32 0.5, %v205_v0  ;;  %v208_v5 = vmul.f32 0.5, %v206_v2  ;;  %v210_v6 = vld [vmem:[%s176_s29 + $0x8] sm:$0xff]  ;;  %s233_s6 = sshll.u32 %s201_s5, 4  ;;  %s738_s28 = scalar_lea.hbm %s784_s2, %s349_s14  ;;  %s733_s6 = int_to_ptr.vmem [resolvable:$true] %s233_s6 }
  0x54   : > { %v211_v4 = vmul.f32 -0.25, %v209_v1  ;;  %v212_v7 = vmul.f32 -0.25, %v210_v6  ;;  %s220_s24 = scalar_lea.sflag [#allocation4], %s719_s30  ;;  %s465_s26 = scalar_lea.vmem %s733_s6, 256 }
  0x55   : > { %p466_p13 = scmp.ne.s32.totalorder %s733_s6, %s465_s26  ;;  %p794_p1 = scmp.ne.s32.totalorder %s789_s21, 0 }
  0x56   : > { %v213_v8 = vadd.f32 %v211_v4, %v207_v3  ;;  %v214_v9 = vadd.f32 %v212_v7, %v208_v5  ;;  %s541_s13 = smov [#allocation7]  }
  0x57   : > { %p467_p12 = pnand %p466_p13, %p794_p1  ;;  %s469_s27 = sshll.u32 %s541_s13, 4  ;;  %s470_s27 = int_to_ptr.vmem [resolvable:$false] %s469_s27 }
  0x58   : > { %v215_v10 = vadd.f32 0.4, %v213_v8  ;;  %v216_v11 = vadd.f32 0.4, %v214_v9  ;;  %s471_s25 = scalar_lea.vmem %s470_s27, 512  ;;  %p472_p5 = scmp.lt.s32.totalorder %s733_s6, %s470_s27 }
  0x59   : > { %p468_p10 = pneg %p467_p12  ;;  %p473_p7 = scmp.lt.s32.totalorder %s471_s25, %s465_s26 }
  0x5a   : > { %217 = vst [vmem:[%s201_s5] sm:$0xff] %v215_v10  ;;  %218 = vst [vmem:[%s201_s5 + $0x8] sm:$0xff] %v216_v11 }
  0x5b   : > { %p474_p9 = por %p473_p7, %p472_p5 }
  0x5d   : > { %p475_p11 = pnand %p474_p9, %p468_p10 }
  0x5f   : > { %478 = shalt.err (!%p475_p11)
}
  0x60   : > { %s479_s7 = scalar_lea.hbm %s738_s28, 256  ;;  %s483_s4 = scalar_lea.hbm %s784_s2, 512 }
  0x61   : > { %p480_p3 = scmp.ne.s32.totalorder %s738_s28, %s479_s7  ;;  %p484_p2 = scmp.lt.u32.totalorder %s738_s28, %s784_s2 }
  0x62   : > { %p485_p4 = scmp.lt.u32.totalorder %s483_s4, %s479_s7  ;;  %p487_p13 = scmp.lt.u32.totalorder %s479_s7, %s738_s28 }
  0x63   : > { %p481_p8 = pnand %p480_p3, %p794_p1 }
  0x64   : > { %p486_p6 = por %p485_p4, %p484_p2 }
  0x65   : > { %p482_p0 = pneg %p481_p8 }
  0x66   : > { %p488_p12 = por %p487_p13, %p486_p6 }
  0x68   : > { %p489_p10 = pnand %p488_p12, %p482_p0 }
  0x6a   : > { %492 = shalt.err (!%p489_p10)
}
  0x6b   : > { %s542_s23 = smov 128   ;;  %s543_s29 = smov 8  }
  0x6c   : > { %354 = dma.vmem_to_hbm [thread:$0]  (%p794_p1), %s733_s6, 256, %s738_s28, %s220_s24, %s542_s23, %s542_s23, %s543_s29  }
  0x6d PF: > { %s248_s5 = sand.u32 1, %s523_s9   ;;  %p795_p5 = scmp.ne.s32.totalorder %s790_s22, 0 }
  0x6e   : > { %p796_p7 = scmp.ge.s32.totalorder %s535_s12, 2  ;;  %s249_s14 = scalar_lea.sflag [#allocation4], %s248_s5 }
  0x70   : > { %p364_p9 = pnand %p796_p7, %p795_p5 }
  0x72   : > { %518 = dma.done.wait (!%p364_p9), %s249_s14, 256  }
  0x73   : > { %520 = vsyncadd (!%p364_p9), %s249_s14, 4294967040  ;;  %p18_p11 = scmp.ge.s32.totalorder %s584_s15, 4   ;;  %s797_s9 = smov %s527_s10 }
  0x74   : > { %s798_s10 = smov %s531_s11  ;;  %s799_s11 = smov %s596_s18 }
  0x75   : > { %s800_s12 = smov %s584_s15  ;;  %20 = sbr.rel (!%p18_p11) target bundleno = 7 (0x7), region = 86 }
  0x7c   :  { %254 = vsyncpa [#allocation3], 1 }
  0x7d   :  { %256 = vsyncpa [#allocation3 + $0x1], 1 }
  0x7e   :  { %257 = vsyncpa [#allocation6], 1 }
  0x7f   :  { %259 = vsyncpa [#allocation6 + $0x1], 1 }
  0x80   :  { %260 = vsyncpa [#allocation4], 1 }
  0x81   :  { %262 = vsyncpa [#allocation4 + $0x1], 1 }

</bundles_post_ra>
